<compile_context>
chip_gen: v6e
topology: v6e:2x2x1
jax: 0.10.0
libtpu: 0.0.40
codegen_flags: <defaults>
</compile_context>

<pallas_src>
import functools

import jax
import jax.numpy as jnp
from jax.experimental import pallas as pl
from jax.experimental.pallas import tpu as pltpu


def _round_up(n, m):
    return ((n + m - 1) // m) * m


def actor_kernel(x_ref, w1_ref, b1_ref, w2_ref, b2_ref, o_ref):
    # fc1 + relu.  bf16 MXU operands, f32 accumulation; elementwise math in f32.
    x = x_ref[...].astype(jnp.bfloat16)
    h = jnp.dot(x, w1_ref[...], preferred_element_type=jnp.float32) + b1_ref[...]
    h = jnp.maximum(h, 0.0)

    # fc2 — narrow (tile_b, a_size) logits, no lane padding.
    logits = jnp.dot(h.astype(jnp.bfloat16), w2_ref[...],
                     preferred_element_type=jnp.float32) + b2_ref[...]

    # Numerically stable softmax with EXACT normalization (rows sum to 1 in f32).
    m = jnp.max(logits, axis=-1, keepdims=True)
    e = jnp.exp(logits - m)
    s = jnp.sum(e, axis=-1, keepdims=True)
    o_ref[...] = (e / s).astype(o_ref.dtype)


def prepare_actor_params(w1, b1, w2, b2):
    """One-time parameter prep (hoisted out of the forward pass):
    bf16 weights for the MXU, f32 biases reshaped to (1, n) for broadcast."""
    return (w1.astype(jnp.bfloat16),
            b1.reshape(1, -1).astype(jnp.float32),
            w2.astype(jnp.bfloat16),
            b2.reshape(1, -1).astype(jnp.float32))


def _choose_tile_b(B, tile_b_max):
    b8 = _round_up(max(B, 1), 8)
    if b8 <= 8:
        return 8
    # At least 2 (and an even number of) grid steps so the "parallel" batch axis
    # can shard across v7x's two TensorCores; minimize batch padding.
    n_steps = max(2, pl.cdiv(b8, tile_b_max))
    if n_steps % 2:
        n_steps += 1
    return _round_up(pl.cdiv(b8, n_steps), 8)


@functools.partial(jax.jit, static_argnames=("tile_b_max",))
def actor_forward(x, w1, b1_2d, w2, b2_2d, *, tile_b_max=8192):
    """x: (B, s_size) any float dtype; params from prepare_actor_params.
    Returns (B, a_size) f32 softmax probabilities."""
    B, s_size = x.shape
    hidden = w1.shape[1]
    a_size = w2.shape[1]

    tile_b = _choose_tile_b(B, tile_b_max)
    b_pad = _round_up(B, tile_b)
    if b_pad != B:
        x = jnp.pad(x, ((0, b_pad - B), (0, 0)))  # padded rows sliced off below

    grid = (b_pad // tile_b,)
    cost = pl.CostEstimate(
        flops=2 * b_pad * (s_size * hidden + hidden * a_size),
        transcendentals=b_pad * a_size,
        bytes_accessed=(b_pad * s_size * x.dtype.itemsize   # x read
                        + b_pad * a_size * 4                 # output write
                        + w1.size * 2 + w2.size * 2          # bf16 weights
                        + (hidden + a_size) * 4),            # f32 biases
    )

    out = pl.pallas_call(
        actor_kernel,
        out_shape=jax.ShapeDtypeStruct((b_pad, a_size), jnp.float32),
        grid_spec=pltpu.PrefetchScalarGridSpec(
            num_scalar_prefetch=0,
            grid=grid,
            in_specs=[
                # x streams per batch tile
                pl.BlockSpec((tile_b, s_size), lambda i: (i, 0)),
                # weights/biases: constant block index -> resident in VMEM
                pl.BlockSpec((s_size, hidden), lambda i: (0, 0)),
                pl.BlockSpec((1, hidden),      lambda i: (0, 0)),
                pl.BlockSpec((hidden, a_size), lambda i: (0, 0)),
                pl.BlockSpec((1, a_size),      lambda i: (0, 0)),
            ],
            # Narrow output block: last dim == full array dim (legal); avoids the
            # 128-lane padded writeback + wrapper slice round trip.
            out_specs=pl.BlockSpec((tile_b, a_size), lambda i: (i, 0)),
        ),
        compiler_params=pltpu.CompilerParams(
            dimension_semantics=("parallel",)),   # shard batch axis across TCs
        cost_estimate=cost,
    )(x, w1, b1_2d, w2, b2_2d)

    return out[:B] if b_pad != B else out


def init_actor_params(key, s_size, a_size):
    """Shapes mirror the PyTorch module.  Weights ~ N(0, 0.1) as in the reference;
    biases use nn.Linear's default uniform(-1/sqrt(fan_in), 1/sqrt(fan_in)).
    Weights are stored transposed: (in_features, out_features)."""
    hidden = (s_size - a_size) // 2
    assert hidden >= 1, "degenerate config: (s_size - a_size)//2 must be >= 1"
    k1, k2, k3, k4 = jax.random.split(key, 4)
    w1 = 0.1 * jax.random.normal(k1, (s_size, hidden), dtype=jnp.float32)
    w2 = 0.1 * jax.random.normal(k2, (hidden, a_size), dtype=jnp.float32)
    bound1 = 1.0 / jnp.sqrt(jnp.float32(s_size))
    bound2 = 1.0 / jnp.sqrt(jnp.float32(hidden))
    b1 = jax.random.uniform(k3, (hidden,), jnp.float32, -bound1, bound1)
    b2 = jax.random.uniform(k4, (a_size,), jnp.float32, -bound2, bound2)
    return w1, b1, w2, b2


def _reference(x, w1, b1, w2, b2):
    h = jnp.maximum(x.astype(jnp.float32) @ w1 + b1, 0.0)
    return jax.nn.softmax(h @ w2 + b2, axis=-1)


if __name__ == "__main__":
    # Small shapes consistent with the module: s_size=32, a_size=8 -> hidden=12
    B, S_SIZE, A_SIZE = 2, 32, 8

    key = jax.random.PRNGKey(0)
    k_x, k_p, k_x2 = jax.random.split(key, 3)
    x = jax.random.normal(k_x, (B, S_SIZE), dtype=jnp.float32)
    w1, b1, w2, b2 = init_actor_params(k_p, S_SIZE, A_SIZE)
    params = prepare_actor_params(w1, b1, w2, b2)   # one-time prep (hoisted)

    # --- small-batch check (single grid step, padded batch rows) ---
    out = jax.block_until_ready(actor_forward(x, *params))
    ref = _reference(x, w1, b1, w2, b2)
    assert out.shape == (B, A_SIZE)
    assert jnp.allclose(out, ref, atol=2e-3, rtol=2e-3), "small-batch mismatch"
    assert jnp.allclose(jnp.sum(out, axis=-1), 1.0, atol=1e-3), "rows must sum to 1"

    # --- multi-tile check: exercises the even multi-step grid + resident weights ---
    B2 = 300
    x2 = jax.random.normal(k_x2, (B2, S_SIZE), dtype=jnp.float32)
    out2 = jax.block_until_ready(actor_forward(x2, *params, tile_b_max=128))
    ref2 = _reference(x2, w1, b1, w2, b2)
    assert out2.shape == (B2, A_SIZE)
    assert jnp.allclose(out2, ref2, atol=2e-3, rtol=2e-3), "multi-tile mismatch"
    assert jnp.allclose(jnp.sum(out2, axis=-1), 1.0, atol=1e-3)

    # --- bf16 activations: no wrapper cast, conversion happens in-kernel ---
    x3 = x2.astype(jnp.bfloat16)
    out3 = jax.block_until_ready(actor_forward(x3, *params, tile_b_max=128))
    ref3 = _reference(x3.astype(jnp.float32), w1, b1, w2, b2)
    assert out3.shape == (B2, A_SIZE)
    assert jnp.allclose(out3, ref3, atol=5e-3, rtol=5e-3), "bf16-input mismatch"
    assert jnp.allclose(jnp.sum(out3, axis=-1), 1.0, atol=1e-3)

    print("KERNEL_OK")
</pallas_src>

<mosaic_0001>
module attributes {stable_mosaic.version = 11 : i64} {
  func.func @actor_kernel(%arg0: i32, %arg1: memref<8x32xf32, #tpu.memory_space<vmem>>, %arg2: memref<32x12xbf16, #tpu.memory_space<vmem>>, %arg3: memref<1x12xf32, #tpu.memory_space<vmem>>, %arg4: memref<12x8xbf16, #tpu.memory_space<vmem>>, %arg5: memref<1x8xf32, #tpu.memory_space<vmem>>, %arg6: memref<8x8xf32, #tpu.memory_space<vmem>>) attributes {dimension_semantics = [#tpu.dimension_semantics<parallel>], iteration_bounds = array<i64: 1>, scalar_prefetch = 0 : i64, scratch_operands = 0 : i64, tpu.core_type = #tpu.core_type<tc>, window_params = [{transform_indices = @transform_0, window_bounds = array<i64: 8, 32>}, {pipeline_mode = #tpu.pipeline_mode<synchronous>, transform_indices = @transform_1, window_bounds = array<i64: 32, 12>}, {pipeline_mode = #tpu.pipeline_mode<synchronous>, transform_indices = @transform_2, window_bounds = array<i64: 1, 12>}, {pipeline_mode = #tpu.pipeline_mode<synchronous>, transform_indices = @transform_3, window_bounds = array<i64: 12, 8>}, {pipeline_mode = #tpu.pipeline_mode<synchronous>, transform_indices = @transform_4, window_bounds = array<i64: 1, 8>}, {transform_indices = @transform_5, window_bounds = array<i64: 8, 8>}]} {
    %c0 = arith.constant 0 : index
    %c0_0 = arith.constant 0 : index
    %0 = vector.load %arg1[%c0, %c0_0] : memref<8x32xf32, #tpu.memory_space<vmem>>, vector<8x32xf32>
    %1 = arith.truncf %0 : vector<8x32xf32> to vector<8x32xbf16>
    %c0_1 = arith.constant 0 : index
    %c0_2 = arith.constant 0 : index
    %2 = vector.load %arg2[%c0_1, %c0_2] : memref<32x12xbf16, #tpu.memory_space<vmem>>, vector<32x12xbf16>
    %cst = arith.constant dense<0.000000e+00> : vector<8x12xf32>
    %3 = tpu.matmul %1, %2, %cst {dimension_numbers = #tpu.dot_dimension_numbers<[1], [0], [0], [1], [0, 0, 1, 1], [], []>} : vector<8x32xbf16>, vector<32x12xbf16>, vector<8x12xf32> -> vector<8x12xf32>
    %c0_3 = arith.constant 0 : index
    %c0_4 = arith.constant 0 : index
    %4 = vector.load %arg3[%c0_3, %c0_4] : memref<1x12xf32, #tpu.memory_space<vmem>>, vector<1x12xf32>
    %5 = vector.broadcast %4 : vector<1x12xf32> to vector<8x12xf32>
    %6 = arith.addf %3, %5 : vector<8x12xf32>
    %cst_5 = arith.constant 0.000000e+00 : f32
    %7 = vector.broadcast %cst_5 : f32 to vector<8x12xf32>
    %8 = arith.maximumf %6, %7 : vector<8x12xf32>
    %9 = arith.truncf %8 : vector<8x12xf32> to vector<8x12xbf16>
    %c0_6 = arith.constant 0 : index
    %c0_7 = arith.constant 0 : index
    %10 = vector.load %arg4[%c0_6, %c0_7] : memref<12x8xbf16, #tpu.memory_space<vmem>>, vector<12x8xbf16>
    %cst_8 = arith.constant dense<0.000000e+00> : vector<8x8xf32>
    %11 = tpu.matmul %9, %10, %cst_8 {dimension_numbers = #tpu.dot_dimension_numbers<[1], [0], [0], [1], [0, 0, 1, 1], [], []>} : vector<8x12xbf16>, vector<12x8xbf16>, vector<8x8xf32> -> vector<8x8xf32>
    %c0_9 = arith.constant 0 : index
    %c0_10 = arith.constant 0 : index
    %12 = vector.load %arg5[%c0_9, %c0_10] : memref<1x8xf32, #tpu.memory_space<vmem>>, vector<1x8xf32>
    %13 = vector.broadcast %12 : vector<1x8xf32> to vector<8x8xf32>
    %14 = arith.addf %11, %13 : vector<8x8xf32>
    %cst_11 = arith.constant dense<0xFF800000> : vector<8xf32>
    %15 = vector.multi_reduction <maximumf>, %14, %cst_11 [1] : vector<8x8xf32> to vector<8xf32>
    %16 = vector.shape_cast %15 : vector<8xf32> to vector<8x1xf32>
    %17 = vector.broadcast %16 : vector<8x1xf32> to vector<8x8xf32>
    %18 = arith.subf %14, %17 : vector<8x8xf32>
    %19 = math.exp %18 : vector<8x8xf32>
    %cst_12 = arith.constant dense<0.000000e+00> : vector<8xf32>
    %20 = vector.multi_reduction <add>, %19, %cst_12 [1] : vector<8x8xf32> to vector<8xf32>
    %21 = vector.shape_cast %20 : vector<8xf32> to vector<8x1xf32>
    %22 = vector.broadcast %21 : vector<8x1xf32> to vector<8x8xf32>
    %23 = arith.divf %19, %22 : vector<8x8xf32>
    %c0_13 = arith.constant 0 : index
    %c0_14 = arith.constant 0 : index
    %24 = vector.load %arg6[%c0_13, %c0_14] : memref<8x8xf32, #tpu.memory_space<vmem>>, vector<8x8xf32>
    tpu.vector_store %arg6[%c0_13, %c0_14], %23 {strides = array<i32>} : memref<8x8xf32, #tpu.memory_space<vmem>>, vector<8x8xf32>,
    return
  }
  func.func @transform_0(%arg0: i32) -> (i32, i32) {
    %c0_i32 = arith.constant 0 : i32
    %c0_i32_0 = arith.constant 0 : i32
    return %arg0, %c0_i32 : i32, i32
  }
  func.func @transform_1(%arg0: i32) -> (i32, i32) {
    %c0_i32 = arith.constant 0 : i32
    %c0_i32_0 = arith.constant 0 : i32
    %c0_i32_1 = arith.constant 0 : i32
    return %c0_i32, %c0_i32_0 : i32, i32
  }
  func.func @transform_2(%arg0: i32) -> (i32, i32) {
    %c0_i32 = arith.constant 0 : i32
    %c0_i32_0 = arith.constant 0 : i32
    %c0_i32_1 = arith.constant 0 : i32
    return %c0_i32, %c0_i32_0 : i32, i32
  }
  func.func @transform_3(%arg0: i32) -> (i32, i32) {
    %c0_i32 = arith.constant 0 : i32
    %c0_i32_0 = arith.constant 0 : i32
    %c0_i32_1 = arith.constant 0 : i32
    return %c0_i32, %c0_i32_0 : i32, i32
  }
  func.func @transform_4(%arg0: i32) -> (i32, i32) {
    %c0_i32 = arith.constant 0 : i32
    %c0_i32_0 = arith.constant 0 : i32
    %c0_i32_1 = arith.constant 0 : i32
    return %c0_i32, %c0_i32_0 : i32, i32
  }
  func.func @transform_5(%arg0: i32) -> (i32, i32) {
    %c0_i32 = arith.constant 0 : i32
    %c0_i32_0 = arith.constant 0 : i32
    return %arg0, %c0_i32 : i32, i32
  }
}

</mosaic_0001>

<bundles_post_ra>
// kernel: actor_forward.1
= control target key start
LH: loop header
LB: loop body
LE: loop exit
PB: predicated region body
PF: predicated region fallthrough
CT: control target
= control target key end

     0   :  { %v206_v0 = vmov 0.0   ;;  %vm207_vm0 = vmmov 0   ;;  %vm46_vm1 = vcmask 261120   ;;  %vm110_vm2 = vcmask 1045504   ;;  %s262_s1 = inlined_call_operand.vmem [shape: bf16[32,12], index: 1, kind: input, shape index: {}]   ;;  %s263_s0 = inlined_call_operand.vmem [shape: f32[8,32], index: 0, kind: input, shape index: {}]   ;;  %s264_s3 = inlined_call_operand.vmem [shape: bf16[12,8], index: 3, kind: input, shape index: {}]   ;;  %s265_s2 = inlined_call_operand.vmem [shape: f32[1,12], index: 2, kind: input, shape index: {}]   ;;  %s266_s4 = inlined_call_operand.vmem [shape: f32[1,8], index: 4, kind: input, shape index: {}]   ;;  %s267_s5 = inlined_call_operand.vmem [shape: f32[8,8], index: 5, kind: output, shape index: {}]  }
   0x1   :  { %183 = vmatprep.subr.bf16.mxu0 %v206_v0  ;;  %v199_v1 = vld [vmem:[%s262_s1 + $0x8] sm:$0xff]   ;;  %187 = vmatprep.mubr.msk.bf16.mxu0 %vm207_vm0, %v206_v0  ;;  %v200_v2 = vld [vmem:[%s262_s1] sm:$0xff]   ;;  %vm106_vm3 = vcmask 97280   ;;  %vm154_vm4 = vcmask 64512  }
   0x2   :  { %191 = vmatprep.subr.bf16.mxu1 %v206_v0  ;;  %193 = vmatprep.mubr.msk.bf16.mxu1 %vm207_vm0, %v206_v0  ;;  %v21_v3 = vld [vmem:[%s263_s0] sm:$0xff] }
   0x3   :  { %184 = vmatpush3.bf16.msra.mxu0 %v199_v1  ;;  %v22_v4 = vpack.c.bf16 %v21_v3, %v21_v3  ;;  %v201_v5 = vld [vmem:[%s264_s3] sm:$0x3f]  }
   0x4   :  { %185 = vmatprep.subr.bf16.mxu0 %v206_v0  ;;  %v112_v6 = vsel %vm110_vm2, %v201_v5, 0  ;;  %v171_v7 = vld [vmem:[%s265_s2] ss:$0 sm:$0xff] }
   0x5   :  { %192 = vmatpush3.bf16.msra.mxu1 %v112_v6  ;;  %v175_v15 = vld [vmem:[%s266_s4] ss:$0 sm:$0xff] }
   0x7   :  { %186 = vmatpush3.bf16.msra.mxu0 %v200_v2 }
   0xa   :  { %188 = vmatmul.mubr.msk.bf16.vlgmr.msra.gmra.mxu0 %vm46_vm1, %v22_v4 }
  0xca   :  { %v84_v8 = vpop.f32.mrf.mxu0 }
  0xcb   :  { %v85_v9 = vadd.f32 %v171_v7, %v84_v8 }
  0xcc   :  { %v189_v10 = vpop.f32.mrf.mxu0 }
  0xcd   :  { %v90_v11 = vmax.f32 %v85_v9, 0.0 }
  0xce   :  { %v87_v12 = vpop.f32.mrf.mxu0 }
  0xcf   :  { %v91_v13 = vpack.c.bf16 %v90_v11, %v90_v11 }
  0xd0   :  { %v190_v14 = vpop.f32.mrf.mxu0 }
  0xd1   :  { %194 = vmatmul.mubr.msk.bf16.vlgmr.msra.gmra.mxu1 %vm106_vm3, %v91_v13 }
 0x191   :  { %v148_v16 = vpop.f32.mrf.mxu1 }
 0x192   :  { %v149_v17 = vadd.f32 %v175_v15, %v148_v16 }
 0x193   :  { %v195_v18 = vpop.f32.mrf.mxu1 }
 0x194   :  { %v155_v19 = vsel %vm154_vm4, %v149_v17, -inf }
 0x195   :  { %156 = vmax.xlane.f32.xlu0 %v155_v19  ;;  %v151_v20 = vpop.f32.mrf.mxu1 }
 0x197   :  { %v196_v21 = vpop.f32.mrf.mxu1 }
 0x21e   :  { %v157_v22 = vpop.xlane.xlu0 %156 }
 0x21f   :  { %v158_v23 = vsub.f32 %v149_v17, %v157_v22 }
 0x221   :  { %v159_v24 = vmul.f32 1.442695, %v158_v23 }
 0x223   :  { %202 = vpow2.f32 %v159_v24 }
 0x230   :  { %v203_v25 = vpop.eup %202 }
 0x231   :  { %v161_v26 = vsel %vm154_vm4, %v203_v25, 0.0 }
 0x232   :  { %162 = vadd.xlane.f32.xlu0 %v161_v26 }
 0x2bb   :  { %v163_v27 = vpop.xlane.xlu0 %162 }
 0x2bc   :  { %204 = vrcp.f32 %v163_v27 }
 0x2c9   :  { %v205_v28 = vpop.eup %204 }
 0x2ca   :  { %v165_v29 = vmul.f32 %v205_v28, %v203_v25 }
 0x2cc   :  { %166 = vst.msk [vmem:[%s267_s5] sm:$0xff] %vm154_vm4, %v165_v29 }

</bundles_post_ra>
